<compile_context>
chip_gen: v5e
topology: v5e:2x2
jax: 0.10.0
libtpu: 0.0.40
codegen_flags: <defaults>
</compile_context>

<pallas_src>
import functools

import jax
import jax.numpy as jnp
from jax import lax
from jax.experimental import pallas as pl
from jax.experimental.pallas import tpu as pltpu

ALPHA = 2.0
BETA = 0.1

LANES = 128            # lane width of the flattened slab
MAX_BLOCK_ROWS = 4096  # 4096 * 128 * 4B = 2 MiB per f32 input block
NUM_SHARDS = 2         # leading "parallel" axis (uses both TCs on v7x)


def _round_up(x, m):
    return (x + m - 1) // m * m


def _wmse_kernel(pred_ref, true_ref, out_ref, *, alpha, beta,
                 block_rows, total_rows, needs_mask):
    c = pl.program_id(0)          # shard axis ("parallel")
    i = pl.program_id(1)          # reduction axis ("arbitrary")

    @pl.when(i == 0)
    def _():
        out_ref[...] = jnp.zeros_like(out_ref)

    p = pred_ref[...].astype(jnp.float32)
    t = true_ref[...].astype(jnp.float32)
    diff = p - t
    w = jnp.where(t > 0.5, jnp.float32(alpha), jnp.float32(beta))
    prod = diff * diff * w

    if needs_mask:
        # Mask rows past the true end of the slab (the last block may
        # overhang, and a shard's trailing steps re-read a clamped block).
        blk = c * pl.num_programs(1) + i
        row0 = blk * block_rows
        row_ids = row0 + lax.broadcasted_iota(jnp.int32, prod.shape, 0)
        prod = jnp.where(row_ids < total_rows, prod, jnp.float32(0.0))

    # vreg-shaped partial accumulation: pure VPU adds, no per-step XLU reduce
    # and no per-step SMEM scalar RMW.  (block_rows % 8 == 0, so the reshape
    # keeps the (8,128) tile layout intact — a zero-cost view.)
    out_ref[...] += jnp.sum(prod.reshape(-1, 8, LANES), axis=0)[None]


def weighted_mse_loss(y_pred, y_true, alpha=ALPHA, beta=BETA):
    assert y_pred.shape == y_true.shape
    n_total = y_pred.size  # true element count (denominator of the mean)

    # Keep the native dtype (bf16 inputs stream at bf16 width; cast happens
    # in-kernel after the VMEM load).
    pred_flat = jnp.ravel(y_pred)
    true_flat = jnp.ravel(y_true)

    # Only pad when the element count is not a multiple of 128 (rare for NN
    # tensors).  Zero padding is exact: pred == true == 0 contributes 0 and we
    # divide by the true n_total.
    pad = (-n_total) % LANES
    if pad:
        pred_flat = jnp.pad(pred_flat, (0, pad))
        true_flat = jnp.pad(true_flat, (0, pad))

    rows = pred_flat.size // LANES
    pred2d = pred_flat.reshape(rows, LANES)
    true2d = true_flat.reshape(rows, LANES)

    block_rows = min(MAX_BLOCK_ROWS, _round_up(rows, 8))
    num_blocks = pl.cdiv(rows, block_rows)
    num_shards = min(NUM_SHARDS, num_blocks)
    steps = pl.cdiv(num_blocks, num_shards)

    # Mask is only needed when the grid covers more rows than the slab has
    # (block overhang and/or uneven shard split).  Skipping it in the common
    # exact-division case removes the iota/compare/select from the hot loop.
    needs_mask = (num_shards * steps * block_rows) != rows

    def in_map(c, i):
        # Clamp so a shard's trailing (empty) steps re-read a valid block; the
        # in-kernel row mask zeroes their contribution.
        return (jnp.minimum(c * steps + i, num_blocks - 1), 0)

    kernel = functools.partial(
        _wmse_kernel, alpha=float(alpha), beta=float(beta),
        block_rows=block_rows, total_rows=rows, needs_mask=needs_mask)

    partials = pl.pallas_call(
        kernel,
        out_shape=jax.ShapeDtypeStruct((num_shards, 8, LANES), jnp.float32),
        grid_spec=pltpu.PrefetchScalarGridSpec(
            num_scalar_prefetch=0,
            grid=(num_shards, steps),
            in_specs=[
                pl.BlockSpec((block_rows, LANES), in_map),
                pl.BlockSpec((block_rows, LANES), in_map),
            ],
            out_specs=pl.BlockSpec((1, 8, LANES), lambda c, i: (c, 0, 0)),
        ),
        compiler_params=pltpu.CompilerParams(
            dimension_semantics=("parallel", "arbitrary")),
    )(pred2d, true2d)

    # Tiny epilogue off the hot loop: cross-lane reduce + mean divide.
    return jnp.sum(partials) / jnp.float32(n_total)


def weighted_mse_loss_ref(y_pred, y_true, alpha=ALPHA, beta=BETA):
    mse = (y_pred.astype(jnp.float32) - y_true.astype(jnp.float32)) ** 2
    w = jnp.where(y_true > 0.5, jnp.float32(alpha), jnp.float32(beta))
    return jnp.mean(mse * w)


if __name__ == "__main__":
    key = jax.random.PRNGKey(0)
    k1, k2 = jax.random.split(key)
    # Small NCHW-like shapes consistent with a segmentation-style loss.
    x_shape = (2, 4, 16, 16)
    y_pred = jax.random.normal(k1, x_shape, dtype=jnp.float32)
    y_true = jax.random.uniform(k2, x_shape, dtype=jnp.float32)

    loss = weighted_mse_loss(y_pred, y_true)
    loss = jax.block_until_ready(loss)

    ref = weighted_mse_loss_ref(y_pred, y_true)
    assert jnp.allclose(loss, ref, rtol=1e-5, atol=1e-6), (loss, ref)

    # Also exercise the padded / masked path (element count not a multiple of
    # 128) to make sure the mean stays exact.
    k3, k4 = jax.random.split(k1)
    odd_shape = (3, 5, 7)
    yp_odd = jax.random.normal(k3, odd_shape, dtype=jnp.float32)
    yt_odd = jax.random.uniform(k4, odd_shape, dtype=jnp.float32)
    loss_odd = jax.block_until_ready(weighted_mse_loss(yp_odd, yt_odd))
    ref_odd = weighted_mse_loss_ref(yp_odd, yt_odd)
    assert jnp.allclose(loss_odd, ref_odd, rtol=1e-5, atol=1e-6), (loss_odd, ref_odd)

    print("KERNEL_OK")
</pallas_src>

<mosaic_0001>
module attributes {stable_mosaic.version = 11 : i64} {
  func.func @_wmse_kernel(%arg0: i32, %arg1: i32, %arg2: memref<16x128xf32, #tpu.memory_space<vmem>>, %arg3: memref<16x128xf32, #tpu.memory_space<vmem>>, %arg4: memref<1x8x128xf32, #tpu.memory_space<vmem>>) attributes {dimension_semantics = [#tpu.dimension_semantics<parallel>, #tpu.dimension_semantics<arbitrary>], iteration_bounds = array<i64: 1, 1>, scalar_prefetch = 0 : i64, scratch_operands = 0 : i64, tpu.core_type = #tpu.core_type<tc>, window_params = [{transform_indices = @transform_0, window_bounds = array<i64: 16, 128>}, {transform_indices = @transform_1, window_bounds = array<i64: 16, 128>}, {transform_indices = @transform_2, window_bounds = array<i64: 1, 8, 128>}]} {
    %c0_i32 = arith.constant 0 : i32
    %0 = arith.cmpi eq, %arg1, %c0_i32 : i32
    %1 = arith.extui %0 : i1 to i32
    %c0_i32_0 = arith.constant 0 : i32
    %2 = arith.cmpi ne, %1, %c0_i32_0 : i32
    scf.if %2 {
      %cst_13 = arith.constant 0.000000e+00 : f32
      %19 = vector.broadcast %cst_13 : f32 to vector<1x8x128xf32>
      %c0_14 = arith.constant 0 : index
      %c0_15 = arith.constant 0 : index
      %c0_16 = arith.constant 0 : index
      %20 = vector.load %arg4[%c0_14, %c0_15, %c0_16] : memref<1x8x128xf32, #tpu.memory_space<vmem>>, vector<1x8x128xf32>
      tpu.vector_store %arg4[%c0_14, %c0_15, %c0_16], %19 {strides = array<i32>} : memref<1x8x128xf32, #tpu.memory_space<vmem>>, vector<1x8x128xf32>,
    } else {
    }
    %c0 = arith.constant 0 : index
    %c0_1 = arith.constant 0 : index
    %3 = vector.load %arg2[%c0, %c0_1] : memref<16x128xf32, #tpu.memory_space<vmem>>, vector<16x128xf32>
    %c0_2 = arith.constant 0 : index
    %c0_3 = arith.constant 0 : index
    %4 = vector.load %arg3[%c0_2, %c0_3] : memref<16x128xf32, #tpu.memory_space<vmem>>, vector<16x128xf32>
    %5 = arith.subf %3, %4 : vector<16x128xf32>
    %cst = arith.constant 5.000000e-01 : f32
    %6 = vector.broadcast %cst : f32 to vector<16x128xf32>
    %7 = arith.cmpf ogt, %4, %6 : vector<16x128xf32>
    %cst_4 = arith.constant 2.000000e+00 : f32
    %cst_5 = arith.constant 1.000000e-01 : f32
    %8 = vector.broadcast %cst_4 : f32 to vector<16x128xf32>
    %9 = vector.broadcast %cst_5 : f32 to vector<16x128xf32>
    %10 = arith.select %7, %8, %9 : vector<16x128xi1>, vector<16x128xf32>
    %11 = arith.mulf %5, %5 : vector<16x128xf32>
    %12 = arith.mulf %11, %10 : vector<16x128xf32>
    %c0_6 = arith.constant 0 : index
    %c0_7 = arith.constant 0 : index
    %c0_8 = arith.constant 0 : index
    %13 = vector.load %arg4[%c0_6, %c0_7, %c0_8] : memref<1x8x128xf32, #tpu.memory_space<vmem>>, vector<1x8x128xf32>
    %14 = vector.shape_cast %12 : vector<16x128xf32> to vector<2x8x128xf32>
    %cst_9 = arith.constant dense<0.000000e+00> : vector<8x128xf32>
    %15 = vector.multi_reduction <add>, %14, %cst_9 [0] : vector<2x8x128xf32> to vector<8x128xf32>
    %16 = vector.shape_cast %15 : vector<8x128xf32> to vector<1x8x128xf32>
    %17 = arith.addf %13, %16 : vector<1x8x128xf32>
    %c0_10 = arith.constant 0 : index
    %c0_11 = arith.constant 0 : index
    %c0_12 = arith.constant 0 : index
    %18 = vector.load %arg4[%c0_10, %c0_11, %c0_12] : memref<1x8x128xf32, #tpu.memory_space<vmem>>, vector<1x8x128xf32>
    tpu.vector_store %arg4[%c0_10, %c0_11, %c0_12], %17 {strides = array<i32>} : memref<1x8x128xf32, #tpu.memory_space<vmem>>, vector<1x8x128xf32>,
    return
  }
  func.func @transform_0(%arg0: i32, %arg1: i32) -> (i32, i32) {
    %c1_i32 = arith.constant 1 : i32
    %0 = arith.muli %arg0, %c1_i32 : i32
    %1 = arith.addi %0, %arg1 : i32
    %c0_i32 = arith.constant 0 : i32
    %2 = arith.minsi %1, %c0_i32 : i32
    %c0_i32_0 = arith.constant 0 : i32
    %c0_i32_1 = arith.constant 0 : i32
    return %2, %c0_i32_0 : i32, i32
  }
  func.func @transform_1(%arg0: i32, %arg1: i32) -> (i32, i32) {
    %c1_i32 = arith.constant 1 : i32
    %0 = arith.muli %arg0, %c1_i32 : i32
    %1 = arith.addi %0, %arg1 : i32
    %c0_i32 = arith.constant 0 : i32
    %2 = arith.minsi %1, %c0_i32 : i32
    %c0_i32_0 = arith.constant 0 : i32
    %c0_i32_1 = arith.constant 0 : i32
    return %2, %c0_i32_0 : i32, i32
  }
  func.func @transform_2(%arg0: i32, %arg1: i32) -> (i32, i32, i32) {
    %c0_i32 = arith.constant 0 : i32
    %c0_i32_0 = arith.constant 0 : i32
    %c0_i32_1 = arith.constant 0 : i32
    return %arg0, %c0_i32, %c0_i32_0 : i32, i32, i32
  }
}

</mosaic_0001>

<bundles_post_ra>
// kernel: tpu_custom_call.1
= control target key start
LH: loop header
LB: loop body
LE: loop exit
PB: predicated region body
PF: predicated region fallthrough
CT: control target
= control target key end

     0   :  { %7 = vsyncpa [#allocation3], 0  ;;  %s224_s0 = inlined_call_operand.hbm [shape: f32[16,128], index: 0, kind: input, shape index: {}]   ;;  %s225_s1 = inlined_call_operand.hbm [shape: f32[16,128], index: 1, kind: input, shape index: {}]   ;;  %s226_s2 = inlined_call_operand.hbm [shape: f32[1,8,128], index: 2, kind: output, shape index: {}]  }
   0x1   :  { %8 = vsyncpa [#allocation6], 0 }
   0x2   :  { %9 = vsyncpa [#allocation4], 0  ;;  %s20_s11 = sshll.u32 %s224_s0, 4  ;;  %s194_s12 = smov [#allocation2]   ;;  %s21_s11 = int_to_ptr.hbm [resolvable:$true] %s20_s11 }
   0x3   :  { %s22_s13 = sshll.u32 %s194_s12, 4  ;;  %s39_s16 = sshll.u32 %s225_s1, 4  ;;  %s23_s13 = int_to_ptr.vmem [resolvable:$true] %s22_s13  ;;  %s40_s16 = int_to_ptr.hbm [resolvable:$true] %s39_s16 }
   0x4   :  { %s195_s17 = smov 128   ;;  %s196_s18 = smov 8  }
   0x5   :  { %28 = dma.hbm_to_vmem [thread:$0]  %s21_s11, 256, %s23_s13, [#allocation3], %s195_s17, %s195_s17, %s196_s18  }
   0x6   :  { %s197_s19 = smov [#allocation5]  }
   0x7   :  { %s41_s20 = sshll.u32 %s197_s19, 4  ;;  %s42_s20 = int_to_ptr.vmem [resolvable:$true] %s41_s20 }
   0x8   :  { %47 = dma.hbm_to_vmem [thread:$0]  %s40_s16, 256, %s42_s20, [#allocation6], %s195_s17, %s195_s17, %s196_s18  }
   0x9   :  { %188 = dma.done.wait [#allocation3], 256  }
   0xa   :  { %189 = vsyncadd [#allocation3], 4294967040 }
   0xb   :  { %190 = dma.done.wait [#allocation6], 256  }
   0xc   :  { %191 = vsyncadd [#allocation6], 4294967040  ;;  %v69_v0 = vld [vmem:[#allocation2] sm:$0xff]  ;;  %v70_v1 = vld [vmem:[#allocation2 + $0x8] sm:$0xff]  ;;  %v198_v6 = vmov 0.1  }
   0xd   :  { %v71_v2 = vld [vmem:[#allocation5] sm:$0xff]  ;;  %v72_v3 = vld [vmem:[#allocation5 + $0x8] sm:$0xff]  ;;  %s199_s0 = smov [#allocation7]   ;;  %s94_s23 = sshll.u32 %s226_s2, 4  ;;  %s95_s23 = int_to_ptr.hbm [resolvable:$true] %s94_s23 }
   0xe   :  { %v73_v4 = vsub.f32 %v69_v0, %v71_v2  ;;  %vm75_vm0 = vcmp.gt.f32.partialorder %v71_v2, 0.5  ;;  %v74_v5 = vsub.f32 %v70_v1, %v72_v3  ;;  %vm76_vm1 = vcmp.gt.f32.partialorder %v72_v3, 0.5  ;;  %s92_s1 = sshll.u32 %s199_s0, 4  ;;  %s93_s1 = int_to_ptr.vmem [resolvable:$true] %s92_s1 }
   0xf   :  { %v77_v7 = vsel %vm75_vm0, 2.0, %v198_v6  ;;  %v78_v8 = vsel %vm76_vm1, 2.0, %v198_v6 }
  0x10   :  { %v79_v9 = vmul.f32 %v73_v4, %v73_v4  ;;  %v80_v10 = vmul.f32 %v74_v5, %v74_v5 }
  0x12   :  { %v81_v11 = vmul.f32 %v79_v9, %v77_v7  ;;  %v82_v12 = vmul.f32 %v80_v10, %v78_v8 }
  0x14   :  { %v84_v13 = vadd.f32 %v82_v12, %v81_v11 }
  0x16   :  { %86 = vst [vmem:[#allocation7] sm:$0xff] %v84_v13 }
  0x17   :  { %97 = dma.vmem_to_hbm [thread:$0]  %s93_s1, 128, %s95_s23, [#allocation4]  }
  0x18   :  { %192 = dma.done.wait [#allocation4], 128  }
  0x19   :  { %193 = vsyncadd [#allocation4], 4294967168 }
  0x1a   :  { %102 = vsyncpa [#allocation3], 1 }
  0x1b   :  { %103 = vsyncpa [#allocation6], 1 }
  0x1c   :  { %104 = vsyncpa [#allocation4], 1 }

</bundles_post_ra>
